<compile_context>
chip_gen: v5e
topology: v5e:2x2
jax: 0.10.0
libtpu: 0.0.40
codegen_flags: <defaults>
</compile_context>

<pallas_src>
import functools

import jax
import jax.numpy as jnp
import numpy as np
from jax.experimental import pallas as pl
from jax.experimental.pallas import tpu as pltpu


# Below this contraction size the MXU is pure latency; use the VPU MAC path.
_VPU_MAC_MAX_K = 32


def make_seasonality_basis(output_dim: int) -> jnp.ndarray:
    """Deterministic parameter S, identical to the PyTorch __init__.

    Returns S with shape (output_dim, ecd), ecd = 2 * int(output_dim/2 - 1) + 1.
    """
    half_minus_one = int(output_dim / 2 - 1)
    n = np.arange(output_dim).astype(np.float32)
    cols = [np.ones(output_dim, dtype=np.float32)]
    cols += [np.cos(n * np.float32(2.0 * np.pi * i)).astype(np.float32)
             for i in range(1, half_minus_one + 1)]
    cols += [np.sin(n * np.float32(2.0 * np.pi * i)).astype(np.float32)
             for i in range(1, half_minus_one + 1)]
    return jnp.asarray(np.stack(cols, axis=1))  # (output_dim, ecd)


def _seasonality_kernel(x_ref, st_ref, o_ref, *, ecd: int, use_mxu: bool):
    if use_mxu:
        # Large contraction: single MXU matmul with f32 accumulation.
        o_ref[...] = jnp.dot(
            x_ref[...], st_ref[...], preferred_element_type=jnp.float32
        ).astype(o_ref.dtype)
    else:
        # Tiny contraction: unrolled VPU broadcast-MAC over the ecd axis.
        # out = sum_i x[:, i:i+1] * S_t[i:i+1, :]
        x = x_ref[...]          # (TB, ecd)
        st = st_ref[...]        # (ecd, N_pad)   lane-dense, VMEM-resident
        acc = x[:, 0:1] * st[0:1, :]
        for i in range(1, ecd):
            acc = acc + x[:, i:i + 1] * st[i:i + 1, :]
        o_ref[...] = acc.astype(o_ref.dtype)


class SeasonalityGenerator:
    """Pallas-backed equivalent of darts' _SeasonalityGenerator."""

    def __init__(self, output_dim: int, batch_tile: int = 1024):
        self.output_dim = output_dim
        self.batch_tile = batch_tile
        # Same parameter as the torch module (orientation (output_dim, ecd)).
        self.S = make_seasonality_basis(output_dim)
        self.ecd = self.S.shape[1]
        # Hoisted, done once: transpose + zero-pad columns to a lane-dense slab.
        self.n_pad = max(128, ((output_dim + 127) // 128) * 128)
        st = jnp.zeros((self.ecd, self.n_pad), jnp.float32)
        self.S_t_padded = st.at[:, :output_dim].set(self.S.astype(jnp.float32).T)

    def __call__(self, x: jnp.ndarray) -> jnp.ndarray:
        """x: (batch, ecd) -> (batch, output_dim), == torch.matmul(x, S.float().T)."""
        batch, ecd = x.shape
        assert ecd == self.ecd, f"expected last dim {self.ecd}, got {ecd}"

        x = x.astype(jnp.float32)

        # Batch tile: multiple of 8 sublanes, capped by batch_tile; pad batch so
        # the grid divides evenly (padded rows are sliced off afterwards).
        tb = min(self.batch_tile, ((batch + 7) // 8) * 8)
        tb = max(8, (tb // 8) * 8)
        batch_pad = ((batch + tb - 1) // tb) * tb
        if batch_pad != batch:
            x = jnp.pad(x, ((0, batch_pad - batch), (0, 0)))

        grid = (pl.cdiv(batch_pad, tb),)
        use_mxu = ecd >= _VPU_MAC_MAX_K
        kernel = functools.partial(_seasonality_kernel, ecd=ecd, use_mxu=use_mxu)

        out = pl.pallas_call(
            kernel,
            out_shape=jax.ShapeDtypeStruct((batch_pad, self.n_pad), jnp.float32),
            grid_spec=pltpu.PrefetchScalarGridSpec(
                num_scalar_prefetch=0,
                grid=grid,
                in_specs=[
                    # x: tiled over batch, pipelined HBM<->VMEM.
                    pl.BlockSpec((tb, ecd), lambda i: (i, 0)),
                    # basis: constant index_map -> stays resident in VMEM.
                    pl.BlockSpec((ecd, self.n_pad), lambda i: (0, 0)),
                ],
                out_specs=pl.BlockSpec((tb, self.n_pad), lambda i: (i, 0)),
            ),
            compiler_params=pltpu.CompilerParams(
                dimension_semantics=("parallel",),
            ),
        )(x, self.S_t_padded)

        return out[:batch, :self.output_dim]


if __name__ == "__main__":
    # Small shapes consistent with N-BEATS usage:
    #   output_dim (forecast length) = 16
    #   -> half_minus_one = 7, ecd = 1 + 7 + 7 = 15
    #   batch = 8
    output_dim = 16
    batch = 8

    gen = SeasonalityGenerator(output_dim)
    ecd = gen.ecd  # 15

    key = jax.random.PRNGKey(0)
    x = jax.random.normal(key, (batch, ecd), dtype=jnp.float32)

    out = gen(x)
    out = jax.block_until_ready(out)

    # Reference check (plain JAX, same semantics as torch.matmul(x, S.float().T)).
    ref = x @ gen.S.astype(jnp.float32).T
    assert out.shape == (batch, output_dim)
    assert jnp.allclose(out, ref, atol=1e-5, rtol=1e-5)

    print("KERNEL_OK")
</pallas_src>

<mosaic_0001>
module attributes {stable_mosaic.version = 11 : i64} {
  func.func @_seasonality_kernel(%arg0: i32, %arg1: memref<8x15xf32, #tpu.memory_space<vmem>>, %arg2: memref<15x128xf32, #tpu.memory_space<vmem>>, %arg3: memref<8x128xf32, #tpu.memory_space<vmem>>) attributes {dimension_semantics = [#tpu.dimension_semantics<parallel>], iteration_bounds = array<i64: 1>, scalar_prefetch = 0 : i64, scratch_operands = 0 : i64, tpu.core_type = #tpu.core_type<tc>, window_params = [{transform_indices = @transform_0, window_bounds = array<i64: 8, 15>}, {pipeline_mode = #tpu.pipeline_mode<synchronous>, transform_indices = @transform_1, window_bounds = array<i64: 15, 128>}, {transform_indices = @transform_2, window_bounds = array<i64: 8, 128>}]} {
    %c0 = arith.constant 0 : index
    %c0_0 = arith.constant 0 : index
    %0 = vector.load %arg1[%c0, %c0_0] : memref<8x15xf32, #tpu.memory_space<vmem>>, vector<8x15xf32>
    %c0_1 = arith.constant 0 : index
    %c0_2 = arith.constant 0 : index
    %1 = vector.load %arg2[%c0_1, %c0_2] : memref<15x128xf32, #tpu.memory_space<vmem>>, vector<15x128xf32>
    %2 = vector.extract_strided_slice %0 {offsets = [0, 0], sizes = [8, 1], strides = [1, 1]} : vector<8x15xf32> to vector<8x1xf32>
    %3 = vector.extract_strided_slice %1 {offsets = [0, 0], sizes = [1, 128], strides = [1, 1]} : vector<15x128xf32> to vector<1x128xf32>
    %4 = vector.broadcast %2 : vector<8x1xf32> to vector<8x128xf32>
    %5 = vector.broadcast %3 : vector<1x128xf32> to vector<8x128xf32>
    %6 = arith.mulf %4, %5 : vector<8x128xf32>
    %7 = vector.extract_strided_slice %0 {offsets = [0, 1], sizes = [8, 1], strides = [1, 1]} : vector<8x15xf32> to vector<8x1xf32>
    %8 = vector.extract_strided_slice %1 {offsets = [1, 0], sizes = [1, 128], strides = [1, 1]} : vector<15x128xf32> to vector<1x128xf32>
    %9 = vector.broadcast %7 : vector<8x1xf32> to vector<8x128xf32>
    %10 = vector.broadcast %8 : vector<1x128xf32> to vector<8x128xf32>
    %11 = arith.mulf %9, %10 : vector<8x128xf32>
    %12 = arith.addf %6, %11 : vector<8x128xf32>
    %13 = vector.extract_strided_slice %0 {offsets = [0, 2], sizes = [8, 1], strides = [1, 1]} : vector<8x15xf32> to vector<8x1xf32>
    %14 = vector.extract_strided_slice %1 {offsets = [2, 0], sizes = [1, 128], strides = [1, 1]} : vector<15x128xf32> to vector<1x128xf32>
    %15 = vector.broadcast %13 : vector<8x1xf32> to vector<8x128xf32>
    %16 = vector.broadcast %14 : vector<1x128xf32> to vector<8x128xf32>
    %17 = arith.mulf %15, %16 : vector<8x128xf32>
    %18 = arith.addf %12, %17 : vector<8x128xf32>
    %19 = vector.extract_strided_slice %0 {offsets = [0, 3], sizes = [8, 1], strides = [1, 1]} : vector<8x15xf32> to vector<8x1xf32>
    %20 = vector.extract_strided_slice %1 {offsets = [3, 0], sizes = [1, 128], strides = [1, 1]} : vector<15x128xf32> to vector<1x128xf32>
    %21 = vector.broadcast %19 : vector<8x1xf32> to vector<8x128xf32>
    %22 = vector.broadcast %20 : vector<1x128xf32> to vector<8x128xf32>
    %23 = arith.mulf %21, %22 : vector<8x128xf32>
    %24 = arith.addf %18, %23 : vector<8x128xf32>
    %25 = vector.extract_strided_slice %0 {offsets = [0, 4], sizes = [8, 1], strides = [1, 1]} : vector<8x15xf32> to vector<8x1xf32>
    %26 = vector.extract_strided_slice %1 {offsets = [4, 0], sizes = [1, 128], strides = [1, 1]} : vector<15x128xf32> to vector<1x128xf32>
    %27 = vector.broadcast %25 : vector<8x1xf32> to vector<8x128xf32>
    %28 = vector.broadcast %26 : vector<1x128xf32> to vector<8x128xf32>
    %29 = arith.mulf %27, %28 : vector<8x128xf32>
    %30 = arith.addf %24, %29 : vector<8x128xf32>
    %31 = vector.extract_strided_slice %0 {offsets = [0, 5], sizes = [8, 1], strides = [1, 1]} : vector<8x15xf32> to vector<8x1xf32>
    %32 = vector.extract_strided_slice %1 {offsets = [5, 0], sizes = [1, 128], strides = [1, 1]} : vector<15x128xf32> to vector<1x128xf32>
    %33 = vector.broadcast %31 : vector<8x1xf32> to vector<8x128xf32>
    %34 = vector.broadcast %32 : vector<1x128xf32> to vector<8x128xf32>
    %35 = arith.mulf %33, %34 : vector<8x128xf32>
    %36 = arith.addf %30, %35 : vector<8x128xf32>
    %37 = vector.extract_strided_slice %0 {offsets = [0, 6], sizes = [8, 1], strides = [1, 1]} : vector<8x15xf32> to vector<8x1xf32>
    %38 = vector.extract_strided_slice %1 {offsets = [6, 0], sizes = [1, 128], strides = [1, 1]} : vector<15x128xf32> to vector<1x128xf32>
    %39 = vector.broadcast %37 : vector<8x1xf32> to vector<8x128xf32>
    %40 = vector.broadcast %38 : vector<1x128xf32> to vector<8x128xf32>
    %41 = arith.mulf %39, %40 : vector<8x128xf32>
    %42 = arith.addf %36, %41 : vector<8x128xf32>
    %43 = vector.extract_strided_slice %0 {offsets = [0, 7], sizes = [8, 1], strides = [1, 1]} : vector<8x15xf32> to vector<8x1xf32>
    %44 = vector.extract_strided_slice %1 {offsets = [7, 0], sizes = [1, 128], strides = [1, 1]} : vector<15x128xf32> to vector<1x128xf32>
    %45 = vector.broadcast %43 : vector<8x1xf32> to vector<8x128xf32>
    %46 = vector.broadcast %44 : vector<1x128xf32> to vector<8x128xf32>
    %47 = arith.mulf %45, %46 : vector<8x128xf32>
    %48 = arith.addf %42, %47 : vector<8x128xf32>
    %49 = vector.extract_strided_slice %0 {offsets = [0, 8], sizes = [8, 1], strides = [1, 1]} : vector<8x15xf32> to vector<8x1xf32>
    %50 = vector.extract_strided_slice %1 {offsets = [8, 0], sizes = [1, 128], strides = [1, 1]} : vector<15x128xf32> to vector<1x128xf32>
    %51 = vector.broadcast %49 : vector<8x1xf32> to vector<8x128xf32>
    %52 = vector.broadcast %50 : vector<1x128xf32> to vector<8x128xf32>
    %53 = arith.mulf %51, %52 : vector<8x128xf32>
    %54 = arith.addf %48, %53 : vector<8x128xf32>
    %55 = vector.extract_strided_slice %0 {offsets = [0, 9], sizes = [8, 1], strides = [1, 1]} : vector<8x15xf32> to vector<8x1xf32>
    %56 = vector.extract_strided_slice %1 {offsets = [9, 0], sizes = [1, 128], strides = [1, 1]} : vector<15x128xf32> to vector<1x128xf32>
    %57 = vector.broadcast %55 : vector<8x1xf32> to vector<8x128xf32>
    %58 = vector.broadcast %56 : vector<1x128xf32> to vector<8x128xf32>
    %59 = arith.mulf %57, %58 : vector<8x128xf32>
    %60 = arith.addf %54, %59 : vector<8x128xf32>
    %61 = vector.extract_strided_slice %0 {offsets = [0, 10], sizes = [8, 1], strides = [1, 1]} : vector<8x15xf32> to vector<8x1xf32>
    %62 = vector.extract_strided_slice %1 {offsets = [10, 0], sizes = [1, 128], strides = [1, 1]} : vector<15x128xf32> to vector<1x128xf32>
    %63 = vector.broadcast %61 : vector<8x1xf32> to vector<8x128xf32>
    %64 = vector.broadcast %62 : vector<1x128xf32> to vector<8x128xf32>
    %65 = arith.mulf %63, %64 : vector<8x128xf32>
    %66 = arith.addf %60, %65 : vector<8x128xf32>
    %67 = vector.extract_strided_slice %0 {offsets = [0, 11], sizes = [8, 1], strides = [1, 1]} : vector<8x15xf32> to vector<8x1xf32>
    %68 = vector.extract_strided_slice %1 {offsets = [11, 0], sizes = [1, 128], strides = [1, 1]} : vector<15x128xf32> to vector<1x128xf32>
    %69 = vector.broadcast %67 : vector<8x1xf32> to vector<8x128xf32>
    %70 = vector.broadcast %68 : vector<1x128xf32> to vector<8x128xf32>
    %71 = arith.mulf %69, %70 : vector<8x128xf32>
    %72 = arith.addf %66, %71 : vector<8x128xf32>
    %73 = vector.extract_strided_slice %0 {offsets = [0, 12], sizes = [8, 1], strides = [1, 1]} : vector<8x15xf32> to vector<8x1xf32>
    %74 = vector.extract_strided_slice %1 {offsets = [12, 0], sizes = [1, 128], strides = [1, 1]} : vector<15x128xf32> to vector<1x128xf32>
    %75 = vector.broadcast %73 : vector<8x1xf32> to vector<8x128xf32>
    %76 = vector.broadcast %74 : vector<1x128xf32> to vector<8x128xf32>
    %77 = arith.mulf %75, %76 : vector<8x128xf32>
    %78 = arith.addf %72, %77 : vector<8x128xf32>
    %79 = vector.extract_strided_slice %0 {offsets = [0, 13], sizes = [8, 1], strides = [1, 1]} : vector<8x15xf32> to vector<8x1xf32>
    %80 = vector.extract_strided_slice %1 {offsets = [13, 0], sizes = [1, 128], strides = [1, 1]} : vector<15x128xf32> to vector<1x128xf32>
    %81 = vector.broadcast %79 : vector<8x1xf32> to vector<8x128xf32>
    %82 = vector.broadcast %80 : vector<1x128xf32> to vector<8x128xf32>
    %83 = arith.mulf %81, %82 : vector<8x128xf32>
    %84 = arith.addf %78, %83 : vector<8x128xf32>
    %85 = vector.extract_strided_slice %0 {offsets = [0, 14], sizes = [8, 1], strides = [1, 1]} : vector<8x15xf32> to vector<8x1xf32>
    %86 = vector.extract_strided_slice %1 {offsets = [14, 0], sizes = [1, 128], strides = [1, 1]} : vector<15x128xf32> to vector<1x128xf32>
    %87 = vector.broadcast %85 : vector<8x1xf32> to vector<8x128xf32>
    %88 = vector.broadcast %86 : vector<1x128xf32> to vector<8x128xf32>
    %89 = arith.mulf %87, %88 : vector<8x128xf32>
    %90 = arith.addf %84, %89 : vector<8x128xf32>
    %c0_3 = arith.constant 0 : index
    %c0_4 = arith.constant 0 : index
    %91 = vector.load %arg3[%c0_3, %c0_4] : memref<8x128xf32, #tpu.memory_space<vmem>>, vector<8x128xf32>
    tpu.vector_store %arg3[%c0_3, %c0_4], %90 {strides = array<i32>} : memref<8x128xf32, #tpu.memory_space<vmem>>, vector<8x128xf32>,
    return
  }
  func.func @transform_0(%arg0: i32) -> (i32, i32) {
    %c0_i32 = arith.constant 0 : i32
    %c0_i32_0 = arith.constant 0 : i32
    return %arg0, %c0_i32 : i32, i32
  }
  func.func @transform_1(%arg0: i32) -> (i32, i32) {
    %c0_i32 = arith.constant 0 : i32
    %c0_i32_0 = arith.constant 0 : i32
    %c0_i32_1 = arith.constant 0 : i32
    return %c0_i32, %c0_i32_0 : i32, i32
  }
  func.func @transform_2(%arg0: i32) -> (i32, i32) {
    %c0_i32 = arith.constant 0 : i32
    %c0_i32_0 = arith.constant 0 : i32
    return %arg0, %c0_i32 : i32, i32
  }
}

</mosaic_0001>

<bundles_post_ra>
// kernel: tpu_custom_call.1
= control target key start
LH: loop header
LB: loop body
LE: loop exit
PB: predicated region body
PF: predicated region fallthrough
CT: control target
= control target key end

     0   :  { %7 = vsyncpa [#allocation3], 0  ;;  %s327_s0 = inlined_call_operand.hbm [shape: f32[8,15], index: 0, kind: input, shape index: {}]   ;;  %s328_s1 = inlined_call_operand.hbm [shape: f32[15,128], index: 1, kind: input, shape index: {}]   ;;  %s329_s2 = inlined_call_operand.hbm [shape: f32[8,128], index: 2, kind: output, shape index: {}]  }
   0x1   :  { %8 = vsyncpa [#allocation6], 0 }
   0x2   :  { %9 = vsyncpa [#allocation4], 0  ;;  %s15_s11 = sshll.u32 %s327_s0, 4  ;;  %s283_s12 = smov [#allocation2]   ;;  %s16_s11 = int_to_ptr.hbm [resolvable:$true] %s15_s11 }
   0x3   :  { %s17_s13 = sshll.u32 %s283_s12, 4  ;;  %s25_s16 = sshll.u32 %s328_s1, 4  ;;  %s18_s13 = int_to_ptr.vmem [resolvable:$true] %s17_s13  ;;  %s26_s16 = int_to_ptr.hbm [resolvable:$true] %s25_s16 }
   0x4   :  { %20 = dma.hbm_to_vmem [thread:$0]  %s16_s11, 128, %s18_s13, [#allocation3]  }
   0x5   :  { %s284_s17 = smov [#allocation5]   ;;  %s285_s19 = smov 128  }
   0x6   :  { %s27_s18 = sshll.u32 %s284_s17, 4  ;;  %s286_s20 = smov 8   ;;  %s28_s18 = int_to_ptr.vmem [resolvable:$true] %s27_s18 }
   0x7   :  { %33 = dma.hbm_to_vmem [thread:$0]  %s26_s16, 256, %s28_s18, [#allocation6], %s285_s19, %s285_s19, %s286_s20  }
   0x8   :  { %277 = dma.done.wait [#allocation3], 128  }
   0x9   :  { %278 = vsyncadd [#allocation3], 4294967168 }
   0xa   :  { %279 = dma.done.wait [#allocation6], 256  }
   0xb   :  { %280 = vsyncadd [#allocation6], 4294967040  ;;  %v287_v0 = vmov 2   ;;  %v288_v1 = vmov 0   ;;  %v289_v2 = vmov 4   ;;  %v42_v3 = vld [vmem:[#allocation2] sm:$0xff] }
   0xc   :  { %191 = vset.pattern.permute.xlu1 %v287_v0  ;;  %189 = vset.pattern.permute.xlu0 %v288_v1  ;;  %v290_v4 = vmov 3   ;;  %v291_v5 = vmov 1   ;;  %v292_v6 = vmov 5   ;;  %v293_v7 = vmov 6   ;;  %v43_v19 = vld [vmem:[#allocation5] sm:$0xff]  ;;  %s302_s0 = smov [#allocation7]  }
   0xd   :  { %193 = vset.pattern.permute.xlu2 %v289_v2  ;;  %60 = vperm.xlu1 %191, %v42_v3   ;;  %v294_v8 = vmov 8   ;;  %v295_v9 = vmov 7   ;;  %v296_v10 = vmov 9   ;;  %v297_v11 = vmov 13   ;;  %v44_v45 = vld [vmem:[#allocation5 + $0x8] sm:$0x7f] }
   0xe   :  { %47 = vperm.xlu0 %189, %v42_v3   ;;  %74 = vperm.xlu2 %193, %v42_v3   ;;  %v298_v12 = vmov 10   ;;  %v299_v13 = vmov 11   ;;  %v300_v14 = vmov 14   ;;  %v301_v15 = vmov 12   ;;  %s156_s1 = sshll.u32 %s302_s0, 4  ;;  %s158_s23 = sshll.u32 %s329_s2, 4  ;;  %s157_s1 = int_to_ptr.vmem [resolvable:$true] %s156_s1  ;;  %s159_s23 = int_to_ptr.hbm [resolvable:$true] %s158_s23 }
   0xf   :  { %v50_v20 = vperm.slane %v43_v19, 0  ;;  %v56_v22 = vperm.slane %v43_v19, 1  ;;  %v63_v23 = vperm.slane %v43_v19, 2  ;;  %v70_v27 = vperm.slane %v43_v19, 3 }
  0x10   :  { %v77_v30 = vperm.slane %v43_v19, 4  ;;  %v84_v34 = vperm.slane %v43_v19, 5  ;;  %v91_v35 = vperm.slane %v43_v19, 6  ;;  %v98_v43 = vperm.slane %v43_v19, 7 }
  0x11   :  { %v105_v48 = vperm.slane %v44_v45, 0  ;;  %v112_v50 = vperm.slane %v44_v45, 1  ;;  %v119_v56 = vperm.slane %v44_v45, 2  ;;  %v126_v60 = vperm.slane %v44_v45, 3 }
  0x12   :  { %v133_v61 = vperm.slane %v44_v45, 4 }
  0x15   :  { %192 = vset.pattern.permute.xlu1 %v290_v4 }
  0x16   :  { %190 = vset.pattern.permute.xlu0 %v291_v5  ;;  %67 = vperm.xlu1 %192, %v42_v3  }
  0x17   :  { %53 = vperm.xlu0 %190, %v42_v3   ;;  %194 = vset.pattern.permute.xlu2 %v292_v6 }
  0x18   :  { %81 = vperm.xlu2 %194, %v42_v3  }
  0x1e   :  { %195 = vset.pattern.permute.xlu1 %v293_v7 }
  0x1f   :  { %197 = vset.pattern.permute.xlu0 %v294_v8  ;;  %88 = vperm.xlu1 %195, %v42_v3   ;;  %v147_v8 = vperm.slane %v44_v45, 6 }
  0x20   :  { %102 = vperm.xlu0 %197, %v42_v3   ;;  %196 = vset.pattern.permute.xlu2 %v295_v9 }
  0x21   :  { %95 = vperm.xlu2 %196, %v42_v3  }
  0x27   :  { %198 = vset.pattern.permute.xlu1 %v296_v10 }
  0x28   :  { %202 = vset.pattern.permute.xlu0 %v297_v11  ;;  %109 = vperm.xlu1 %198, %v42_v3  }
  0x29   :  { %137 = vperm.xlu0 %202, %v42_v3   ;;  %199 = vset.pattern.permute.xlu2 %v298_v12 }
  0x2a   :  { %116 = vperm.xlu2 %199, %v42_v3  }
  0x30   :  { %200 = vset.pattern.permute.xlu1 %v299_v13 }
  0x31   :  { %204 = vset.pattern.permute.xlu0 %v300_v14  ;;  %123 = vperm.xlu1 %200, %v42_v3  }
  0x32   :  { %201 = vset.pattern.permute.xlu2 %v301_v15 }
  0x33   :  { %130 = vperm.xlu2 %201, %v42_v3  }
  0x39   :  { %203 = vset.pattern.permute.xlu1 %v300_v14 }
  0x3a   :  { %144 = vperm.xlu1 %203, %v42_v3   ;;  %v140_v3 = vperm.slane %v44_v45, 5 }
  0x68   :  { %v75_v16 = vpop.permute.xlu2 %74 }
  0x69   :  { %v78_v37 = vmul.f32 %v77_v30, %v75_v16 }
  0x72   :  { %v82_v21 = vpop.permute.xlu2 %81 }
  0x73   :  { %v85_v40 = vmul.f32 %v84_v34, %v82_v21 }
  0x7b   :  { %v96_v36 = vpop.permute.xlu2 %95 }
  0x7c   :  { %v99_v47 = vmul.f32 %v98_v43, %v96_v36 }
  0x7f   :  { %v61_v17 = vpop.permute.xlu1 %60 }
  0x80   :  { %v48_v18 = vpop.permute.xlu0 %47  ;;  %v64_v29 = vmul.f32 %v63_v23, %v61_v17 }
  0x81   :  { %v51_v24 = vmul.f32 %v50_v20, %v48_v18 }
  0x84   :  { %v117_v51 = vpop.permute.xlu2 %116 }
  0x85   :  { %v120_v59 = vmul.f32 %v119_v56, %v117_v51 }
  0x88   :  { %v68_v25 = vpop.permute.xlu1 %67 }
  0x89   :  { %v54_v26 = vpop.permute.xlu0 %53  ;;  %v71_v32 = vmul.f32 %v70_v27, %v68_v25 }
  0x8a   :  { %v57_v28 = vmul.f32 %v56_v22, %v54_v26 }
  0x8c   :  { %v58_v31 = vadd.f32 %v57_v28, %v51_v24 }
  0x8d   :  { %v131_v62 = vpop.permute.xlu2 %130 }
  0x8e   :  { %v65_v33 = vadd.f32 %v64_v29, %v58_v31  ;;  %v134_v2 = vmul.f32 %v133_v61, %v131_v62 }
  0x90   :  { %v72_v38 = vadd.f32 %v71_v32, %v65_v33 }
  0x91   :  { %v89_v41 = vpop.permute.xlu1 %88 }
  0x92   :  { %v79_v39 = vadd.f32 %v78_v37, %v72_v38  ;;  %v92_v42 = vmul.f32 %v91_v35, %v89_v41  ;;  %v103_v49 = vpop.permute.xlu0 %102 }
  0x93   :  { %v106_v53 = vmul.f32 %v105_v48, %v103_v49 }
  0x94   :  { %v86_v44 = vadd.f32 %v85_v40, %v79_v39 }
  0x96   :  { %v93_v46 = vadd.f32 %v92_v42, %v86_v44 }
  0x98   :  { %v100_v52 = vadd.f32 %v99_v47, %v93_v46 }
  0x9a   :  { %v110_v54 = vpop.permute.xlu1 %109  ;;  %v107_v57 = vadd.f32 %v106_v53, %v100_v52 }
  0x9b   :  { %v113_v55 = vmul.f32 %v112_v50, %v110_v54  ;;  %v138_v5 = vpop.permute.xlu0 %137 }
  0x9c   :  { %v141_v7 = vmul.f32 %v140_v3, %v138_v5 }
  0x9d   :  { %v114_v58 = vadd.f32 %v113_v55, %v107_v57 }
  0x9f   :  { %v121_v0 = vadd.f32 %v120_v59, %v114_v58 }
  0xa3   :  { %v124_v63 = vpop.permute.xlu1 %123 }
  0xa4   :  { %v127_v1 = vmul.f32 %v126_v60, %v124_v63 }
  0xa6   :  { %v128_v4 = vadd.f32 %v127_v1, %v121_v0 }
  0xa8   :  { %v135_v6 = vadd.f32 %v134_v2, %v128_v4 }
  0xaa   :  { %v142_v10 = vadd.f32 %v141_v7, %v135_v6 }
  0xac   :  { %v145_v9 = vpop.permute.xlu1 %144 }
  0xad   :  { %v148_v11 = vmul.f32 %v147_v8, %v145_v9 }
  0xaf   :  { %v149_v12 = vadd.f32 %v148_v11, %v142_v10 }
  0xb1   :  { %150 = vst [vmem:[#allocation7] sm:$0xff] %v149_v12 }
  0xb2   :  { %161 = dma.vmem_to_hbm [thread:$0]  %s157_s1, 128, %s159_s23, [#allocation4]  }
  0xb3   :  { %281 = dma.done.wait [#allocation4], 128  }
  0xb4   :  { %282 = vsyncadd [#allocation4], 4294967168 }
  0xb5   :  { %166 = vsyncpa [#allocation3], 1 }
  0xb6   :  { %167 = vsyncpa [#allocation6], 1 }
  0xb7   :  { %168 = vsyncpa [#allocation4], 1 }

</bundles_post_ra>
